<compile_context>
chip_gen: v6e
topology: v6e:2x2x1
jax: 0.10.0
libtpu: 0.0.40
codegen_flags: <defaults>
</compile_context>

<pallas_src>
import functools
import math

import jax
import jax.numpy as jnp
from jax import lax
from jax.experimental import pallas as pl
from jax.experimental.pallas import tpu as pltpu


def _round_up(a, b):
    return -(-a // b) * b


def _gram_kernel(x_ref, g_ref, *, td, d_grp, k_per_split, cast_to_bf16):
    """Accumulate G += x^T x over the reduction axis (grid axis 1) per split."""
    i = pl.program_id(0)          # parallel split (TensorCore) index
    k = pl.program_id(1)          # reduction-tile index within the split

    @pl.when(k == 0)
    def _():
        g_ref[...] = jnp.zeros_like(g_ref)

    # Valid rows in this tile: <= 0 for fully out-of-range overhang tiles,
    # >= td for full tiles.  td / d_grp / k_per_split are compile-time ints.
    t = i * k_per_split + k
    valid = d_grp - t * td

    x = x_ref[...]                                   # (td, n_pack)
    if cast_to_bf16 and x.dtype == jnp.float32:
        x = x.astype(jnp.bfloat16)                   # MXU-native rate (v5e)

    def _accum(xx):
        # TN contraction (contract axis 0 of both operands): no x.T needed.
        g_ref[...] += lax.dot_general(
            xx, xx, dimension_numbers=(((0,), (0,)), ((), ())),
            preferred_element_type=jnp.float32)

    @pl.when(valid >= td)                            # fast path: full tile
    def _():
        _accum(x)

    @pl.when(valid < td)                             # tail: mask invalid rows
    def _():
        row = lax.broadcasted_iota(jnp.int32, x.shape, 0)
        _accum(jnp.where(row < valid, x, jnp.zeros_like(x)))


def thomson_final(filt, n_filt, power='0', *, tile_bytes=None,
                  max_tile_rows=None, cast_to_bf16=False):
    """Pallas implementation of ThomsonFinal(n_filt, power).forward(filt)."""
    if power not in ('0', '1', '2', 'a0', 'a1', 'a2'):
        raise ValueError(f"unknown power mode: {power}")
    n = int(n_filt)

    x = jnp.reshape(filt, (-1, n))
    if x.dtype not in (jnp.float32, jnp.bfloat16):
        # Stream other dtypes as bf16 (half the HBM traffic of f32); the Gram
        # is accumulated in f32 inside the kernel either way.
        x = x.astype(jnp.bfloat16)
    d = x.shape[0]
    itemsize = jnp.dtype(x.dtype).itemsize
    sub = 8 if itemsize == 4 else 16                 # sublane multiple

    # ---- Lane packing: fold m rows into lanes so n_pack = m*n is lane-dense.
    m_full = 128 // math.gcd(n, 128)                 # n_pack would be lcm(n,128)
    if m_full * n > 512:                             # keep Gram accumulator small
        m_full = 1
    m = math.gcd(m_full, d)                          # only a free reshape (no copy)
    n_pack = m * n
    d_grp = d // m
    xp = jnp.reshape(x, (d_grp, n_pack))             # pure metadata reshape

    # ---- Reduction-tile rows: as large as the per-buffer VMEM budget allows.
    if tile_bytes is None:
        tile_bytes = 8 << 20                         # ~8 MiB/buffer (v5e/v6e)
        try:
            # v7x: 64 MiB VMEM/TC but 3.2 TB/s HBM/TC -> bigger tiles pay off.
            if pltpu.get_tpu_info().vmem_capacity_bytes <= (64 << 20):
                tile_bytes = 16 << 20
        except Exception:
            pass
    td = max(sub, int(tile_bytes) // (n_pack * itemsize))
    td = (td // 256) * 256 if td >= 256 else (td // sub) * sub
    # Rows each of the two splits actually needs (sublane-aligned).
    td = min(td, _round_up(max(1, -(-d_grp // 2)), sub))
    if max_tile_rows is not None:
        td = min(td, max(sub, (int(max_tile_rows) // sub) * sub))
    td = max(td, sub)

    num_tiles = -(-d_grp // td)
    num_splits = 2 if num_tiles >= 2 else 1          # one split per TensorCore (v7x)
    k_per_split = -(-num_tiles // num_splits)

    if num_splits * k_per_split == num_tiles:
        def in_map(i, k):
            return (i * k_per_split + k, 0)
    else:
        # One overhang tile when num_tiles is odd: clamp its block index into
        # range (safe re-read); the kernel's valid<=0 mask makes it exact zero.
        def in_map(i, k):
            return (jnp.minimum(i * k_per_split + k, num_tiles - 1), 0)

    kernel = functools.partial(
        _gram_kernel, td=td, d_grp=d_grp, k_per_split=k_per_split,
        cast_to_bf16=cast_to_bf16)

    # Double-buffered input + double-buffered Gram output block + headroom.
    vmem_bytes = 2 * td * n_pack * itemsize + 2 * n_pack * n_pack * 4 + (8 << 20)

    partial_grams = pl.pallas_call(
        kernel,
        out_shape=jax.ShapeDtypeStruct((num_splits, n_pack, n_pack), jnp.float32),
        grid_spec=pltpu.PrefetchScalarGridSpec(
            num_scalar_prefetch=0,
            grid=(num_splits, k_per_split),
            in_specs=[pl.BlockSpec((td, n_pack), in_map)],
            out_specs=pl.BlockSpec((None, n_pack, n_pack),
                                   lambda i, k: (i, 0, 0)),
        ),
        compiler_params=pltpu.CompilerParams(
            dimension_semantics=("parallel", "arbitrary"),
            vmem_limit_bytes=int(vmem_bytes)),
    )(xp)

    # ---- O(n^2) finalize in plain JAX (per perf review) -------------------
    gram_packed = jnp.sum(partial_grams, axis=0)     # (n_pack, n_pack) f32
    if m > 1:
        # Sum the m diagonal n x n blocks of the packed Gram -> true X^T X.
        g4 = gram_packed.reshape(m, n, m, n)
        gram = jnp.sum(jnp.diagonal(g4, axis1=0, axis2=2), axis=-1)   # (n, n)
    else:
        gram = gram_packed

    filt_norm = jnp.sqrt(jnp.diagonal(gram)) + 0.0001                 # (n,)
    norm_mat = jnp.outer(filt_norm, filt_norm) + 1e-06
    inner_pro = gram / norm_mat
    eye = jnp.eye(n, dtype=jnp.float32)

    if power == '0':
        final = -jnp.log(2.0 - 2.0 * inner_pro + eye)
        scale = 10.0
    elif power == '1':
        final = (2.0 - 2.0 * inner_pro + eye) ** -0.5
        scale = 10.0
    elif power == '2':
        final = (2.0 - 2.0 * inner_pro + eye) ** -1.0
        scale = 10.0
    elif power == 'a0':
        final = -jnp.log(jnp.arccos(inner_pro) / math.pi + 0.0001)
        scale = 10.0
    elif power == 'a1':
        final = (jnp.arccos(inner_pro) / math.pi + 0.0001) ** -1.0
        scale = 1.0
    else:  # 'a2'
        final = (jnp.arccos(inner_pro) / math.pi + 0.0001) ** -2.0
        scale = 1.0

    final = final - jnp.triu(final, -1)
    cnt = n * (n - 1) / 2.0 + 1e-08
    return scale * jnp.sum(final) / cnt


def _thomson_ref(filt, n_filt, power='0'):
    """Pure-JAX reference mirroring the PyTorch forward (f32, high precision)."""
    f = jnp.reshape(filt, (-1, n_filt)).astype(jnp.float32)
    n = n_filt
    gram = jnp.matmul(f.T, f, precision=lax.Precision.HIGHEST)
    filt_norm = jnp.sqrt(jnp.sum(f * f, axis=0)) + 0.0001
    norm_mat = jnp.outer(filt_norm, filt_norm) + 1e-06
    inner_pro = gram / norm_mat
    eye = jnp.eye(n, dtype=jnp.float32)
    if power == '0':
        final = -jnp.log(2.0 - 2.0 * inner_pro + eye); scale = 10.0
    elif power == '1':
        final = (2.0 - 2.0 * inner_pro + eye) ** -0.5; scale = 10.0
    elif power == '2':
        final = (2.0 - 2.0 * inner_pro + eye) ** -1.0; scale = 10.0
    elif power == 'a0':
        final = -jnp.log(jnp.arccos(inner_pro) / math.pi + 0.0001); scale = 10.0
    elif power == 'a1':
        final = (jnp.arccos(inner_pro) / math.pi + 0.0001) ** -1.0; scale = 1.0
    else:  # 'a2'
        final = (jnp.arccos(inner_pro) / math.pi + 0.0001) ** -2.0; scale = 1.0
    final = final - jnp.triu(final, -1)
    cnt = n * (n - 1) / 2.0 + 1e-08
    return scale * jnp.sum(final) / cnt


if __name__ == "__main__":
    key = jax.random.PRNGKey(0)
    k1, k2, k3 = jax.random.split(key, 3)

    # Case 1: n_filt=16, NCHW input, numel=2048 -> X is (128,16); lane-packed
    # 8x to (16,128); 2-way core split, one full tile per split.
    x1 = jax.random.normal(k1, (2, 4, 16, 16), dtype=jnp.float32)
    for p in ('0', '1', '2'):
        got = jax.block_until_ready(thomson_final(x1, 16, p))
        ref = jax.block_until_ready(_thomson_ref(x1, 16, p))
        assert jnp.allclose(got, ref, rtol=1e-4, atol=1e-4), (p, got, ref)

    # Case 2: D=300 rows (not a multiple of the tile): exercises the in-kernel
    # tail masking (no wrapper-side zero padding), multi-step accumulation,
    # and an odd tile count (clamped-index overhang tile, fully masked).
    x2 = jax.random.normal(k2, (3, 5, 20, 16), dtype=jnp.float32)
    for p, kw in (('0', {}),
                  ('2', dict(max_tile_rows=8)),
                  ('1', dict(max_tile_rows=16)),   # 5 tiles -> overhang tile
                  ('a0', {}), ('a1', {}), ('a2', {})):
        got = jax.block_until_ready(thomson_final(x2, 16, p, **kw))
        ref = jax.block_until_ready(_thomson_ref(x2, 16, p))
        assert jnp.allclose(got, ref, rtol=1e-4, atol=1e-4), (p, got, ref)

    # Case 3: n_filt=24 (doesn't divide 128): generalized lane packing to
    # n_pack = lcm(24,128) = 384.
    x3 = jax.random.normal(k3, (2, 3, 8, 8), dtype=jnp.float32)
    got = jax.block_until_ready(thomson_final(x3, 24, '1'))
    ref = jax.block_until_ready(_thomson_ref(x3, 24, '1'))
    assert jnp.allclose(got, ref, rtol=1e-4, atol=1e-4), (got, ref)

    # Case 4: bf16 streaming, and the v5e cast-to-bf16-before-MXU flag.
    got = jax.block_until_ready(thomson_final(x1.astype(jnp.bfloat16), 16, '0'))
    ref = jax.block_until_ready(_thomson_ref(x1, 16, '0'))
    assert jnp.allclose(got, ref, rtol=5e-2, atol=5e-2), (got, ref)
    got = jax.block_until_ready(thomson_final(x2, 16, '2', cast_to_bf16=True))
    ref = jax.block_until_ready(_thomson_ref(x2, 16, '2'))
    assert jnp.allclose(got, ref, rtol=5e-2, atol=5e-2), (got, ref)

    print("KERNEL_OK")
</pallas_src>

<mosaic_0001>
module attributes {stable_mosaic.version = 11 : i64} {
  func.func @_gram_kernel(%arg0: i32, %arg1: i32, %arg2: memref<8x128xf32, #tpu.memory_space<vmem>>, %arg3: memref<1x128x128xf32, #tpu.memory_space<vmem>>) attributes {dimension_semantics = [#tpu.dimension_semantics<parallel>, #tpu.dimension_semantics<arbitrary>], iteration_bounds = array<i64: 2, 1>, scalar_prefetch = 0 : i64, scratch_operands = 0 : i64, tpu.core_type = #tpu.core_type<tc>, window_params = [{transform_indices = @transform_0, window_bounds = array<i64: 8, 128>}, {transform_indices = @transform_1, window_bounds = array<i64: 1, 128, 128>}]} {
    %c0_i32 = arith.constant 0 : i32
    %0 = arith.cmpi eq, %arg1, %c0_i32 : i32
    %1 = arith.extui %0 : i1 to i32
    %c0_i32_0 = arith.constant 0 : i32
    %2 = arith.cmpi ne, %1, %c0_i32_0 : i32
    scf.if %2 {
      %cst = arith.constant 0.000000e+00 : f32
      %14 = vector.broadcast %cst : f32 to vector<128x128xf32>
      %c0_6 = arith.constant 0 : index
      %c0_7 = arith.constant 0 : index
      %c0_8 = arith.constant 0 : index
      %15 = vector.load %arg3[%c0_6, %c0_7, %c0_8] : memref<1x128x128xf32, #tpu.memory_space<vmem>>, vector<1x128x128xf32>
      %16 = vector.shape_cast %15 : vector<1x128x128xf32> to vector<128x128xf32>
      %17 = vector.shape_cast %14 : vector<128x128xf32> to vector<1x128x128xf32>
      tpu.vector_store %arg3[%c0_6, %c0_7, %c0_8], %17 {strides = array<i32>} : memref<1x128x128xf32, #tpu.memory_space<vmem>>, vector<1x128x128xf32>,
    } else {
    }
    %c1_i32 = arith.constant 1 : i32
    %3 = arith.muli %arg0, %c1_i32 : i32
    %4 = arith.addi %3, %arg1 : i32
    %c8_i32 = arith.constant 8 : i32
    %5 = arith.muli %4, %c8_i32 : i32
    %c16_i32 = arith.constant 16 : i32
    %6 = arith.subi %c16_i32, %5 : i32
    %c0 = arith.constant 0 : index
    %c0_1 = arith.constant 0 : index
    %7 = vector.load %arg2[%c0, %c0_1] : memref<8x128xf32, #tpu.memory_space<vmem>>, vector<8x128xf32>
    %c8_i32_2 = arith.constant 8 : i32
    %8 = arith.cmpi sge, %6, %c8_i32_2 : i32
    %9 = arith.extui %8 : i1 to i32
    %c0_i32_3 = arith.constant 0 : i32
    %10 = arith.cmpi ne, %9, %c0_i32_3 : i32
    scf.if %10 {
      %c0_6 = arith.constant 0 : index
      %c0_7 = arith.constant 0 : index
      %c0_8 = arith.constant 0 : index
      %14 = vector.load %arg3[%c0_6, %c0_7, %c0_8] : memref<1x128x128xf32, #tpu.memory_space<vmem>>, vector<1x128x128xf32>
      %15 = vector.shape_cast %14 : vector<1x128x128xf32> to vector<128x128xf32>
      %cst = arith.constant dense<0.000000e+00> : vector<128x128xf32>
      %16 = tpu.matmul %7, %7, %cst {dimension_numbers = #tpu.dot_dimension_numbers<[0], [0], [1], [1], [0, 1, 1, 1], [], []>} : vector<8x128xf32>, vector<8x128xf32>, vector<128x128xf32> -> vector<128x128xf32>
      %17 = arith.addf %15, %16 : vector<128x128xf32>
      %c0_9 = arith.constant 0 : index
      %c0_10 = arith.constant 0 : index
      %c0_11 = arith.constant 0 : index
      %18 = vector.load %arg3[%c0_9, %c0_10, %c0_11] : memref<1x128x128xf32, #tpu.memory_space<vmem>>, vector<1x128x128xf32>
      %19 = vector.shape_cast %18 : vector<1x128x128xf32> to vector<128x128xf32>
      %20 = vector.shape_cast %17 : vector<128x128xf32> to vector<1x128x128xf32>
      tpu.vector_store %arg3[%c0_9, %c0_10, %c0_11], %20 {strides = array<i32>} : memref<1x128x128xf32, #tpu.memory_space<vmem>>, vector<1x128x128xf32>,
    } else {
    }
    %c8_i32_4 = arith.constant 8 : i32
    %11 = arith.cmpi slt, %6, %c8_i32_4 : i32
    %12 = arith.extui %11 : i1 to i32
    %c0_i32_5 = arith.constant 0 : i32
    %13 = arith.cmpi ne, %12, %c0_i32_5 : i32
    scf.if %13 {
      %14 = tpu.iota {dimensions = array<i32: 0>} : vector<8x128xi32>
      %15 = vector.broadcast %6 : i32 to vector<8x128xi32>
      %16 = arith.cmpi slt, %14, %15 : vector<8x128xi32>
      %cst = arith.constant 0.000000e+00 : f32
      %17 = vector.broadcast %cst : f32 to vector<8x128xf32>
      %18 = arith.select %16, %7, %17 : vector<8x128xi1>, vector<8x128xf32>
      %c0_6 = arith.constant 0 : index
      %c0_7 = arith.constant 0 : index
      %c0_8 = arith.constant 0 : index
      %19 = vector.load %arg3[%c0_6, %c0_7, %c0_8] : memref<1x128x128xf32, #tpu.memory_space<vmem>>, vector<1x128x128xf32>
      %20 = vector.shape_cast %19 : vector<1x128x128xf32> to vector<128x128xf32>
      %cst_9 = arith.constant dense<0.000000e+00> : vector<128x128xf32>
      %21 = tpu.matmul %18, %18, %cst_9 {dimension_numbers = #tpu.dot_dimension_numbers<[0], [0], [1], [1], [0, 1, 1, 1], [], []>} : vector<8x128xf32>, vector<8x128xf32>, vector<128x128xf32> -> vector<128x128xf32>
      %22 = arith.addf %20, %21 : vector<128x128xf32>
      %c0_10 = arith.constant 0 : index
      %c0_11 = arith.constant 0 : index
      %c0_12 = arith.constant 0 : index
      %23 = vector.load %arg3[%c0_10, %c0_11, %c0_12] : memref<1x128x128xf32, #tpu.memory_space<vmem>>, vector<1x128x128xf32>
      %24 = vector.shape_cast %23 : vector<1x128x128xf32> to vector<128x128xf32>
      %25 = vector.shape_cast %22 : vector<128x128xf32> to vector<1x128x128xf32>
      tpu.vector_store %arg3[%c0_10, %c0_11, %c0_12], %25 {strides = array<i32>} : memref<1x128x128xf32, #tpu.memory_space<vmem>>, vector<1x128x128xf32>,
    } else {
    }
    return
  }
  func.func @transform_0(%arg0: i32, %arg1: i32) -> (i32, i32) {
    %c1_i32 = arith.constant 1 : i32
    %0 = arith.muli %arg0, %c1_i32 : i32
    %1 = arith.addi %0, %arg1 : i32
    %c0_i32 = arith.constant 0 : i32
    %c0_i32_0 = arith.constant 0 : i32
    return %1, %c0_i32 : i32, i32
  }
  func.func @transform_1(%arg0: i32, %arg1: i32) -> (i32, i32, i32) {
    %c0_i32 = arith.constant 0 : i32
    %c0_i32_0 = arith.constant 0 : i32
    %c0_i32_1 = arith.constant 0 : i32
    return %arg0, %c0_i32, %c0_i32_0 : i32, i32, i32
  }
}

</mosaic_0001>

<bundles_post_ra>
// kernel: tpu_custom_call.1
= control target key start
LH: loop header
LB: loop body
LE: loop exit
PB: predicated region body
PF: predicated region fallthrough
CT: control target
= control target key end

     0   :  { %6 = vsyncpa [#allocation3], 0  ;;  %s1444_s0 = inlined_call_operand.hbm [shape: f32[16,128], index: 0, kind: input, shape index: {}]   ;;  %s1445_s1 = inlined_call_operand.hbm [shape: f32[2,128,128], index: 1, kind: output, shape index: {}]  }
   0x1   :  { %8 = vsyncpa [#allocation3 + $0x1], 0 }
   0x2   :  { %9 = vsyncpa [#allocation4], 0 }
   0x3   :  { %11 = vsyncpa [#allocation4 + $0x1], 0  ;;  %s1162_s6 = smov 0   ;;  %s1164_s7 = smov 0  }
   0x4   :  { %s1166_s8 = smov 0   ;;  %s1168_s9 = smov 0  }
   0x5   :  { %s1170_s10 = smov 0   ;;  %s1172_s11 = smov 0  }
   0x6 LB: > { %s829_s12 = sadd.s32 4294967295, %s1145_s11   ;;  %s830_s13 = sadd.s32 4294967294, %s1145_s11   ;;  %s1145_s11 = sphi %s1172_s11, %s17_s11   ;;  %s1141_s10 = sphi %s1170_s10, %s1457_s10   ;;  %s1137_s9 = sphi %s1168_s9, %s1456_s9   ;;  %s1133_s8 = sphi %s1166_s8, %s1455_s8   ;;  %s1129_s7 = sphi %s1164_s7, %s1454_s7   ;;  %s1125_s6 = sphi %s1162_s6, %s1453_s6  }
   0x7   : > { %s29_s14 = sadd.s32 1, %s1141_s10  ;;  %s38_s15 = sadd.s32 1, %s1133_s8 }
   0x8   : > { %p31_p0 = scmp.ge.s32.totalorder %s29_s14, 2  ;;  %p45_p1 = scmp.ne.s32.totalorder %s1133_s8, %s1129_s7 }
   0x9   : > { %p46_p2 = scmp.eq.s32.totalorder %s1145_s11, 0  ;;  %p51_p3 = scmp.ne.s32.totalorder %s1129_s7, %s1125_s6 }
   0xa   : > { %s1459_s14 = smov (%p31_p0, %s29_s14), 0  ;;  %p52_p5 = scmp.eq.s32.totalorder %s829_s12, 0 }
   0xb   : > { %p1203_p4 = por %p46_p2, %p45_p1  ;;  %s35_s17 = ssub.s32 %s1141_s10, %s1459_s14 }
   0xc   : > { %p75_p6 = scmp.eq.s32.totalorder %s829_s12, 1  ;;  %p36_p7 = scmp.eq.s32.totalorder %s35_s17, 0 }
   0xd   : > { %p1209_p8 = por %p52_p5, %p51_p3  ;;  %p81_p10 = scmp.eq.s32.totalorder %s830_s13, 1 }
   0xe   : > { %p1213_p9 = por %p75_p6, %p45_p1  ;;  %p982_p13 = scmp.lt.s32.totalorder %s1145_s11, 2 }
   0xf   : > { %s1218_s20 = scalar_select %p36_p7, %s1133_s8, %s38_s15  }
  0x10   : > { %p1220_p11 = por %p81_p10, %p51_p3  ;;  %s101_s22 = sand.u32 1, %s1133_s8  }
  0x11   : > { %s833_s23 = sshll.u32 %s101_s22, 3  ;;  %s834_s24 = sshll.u32 %s1141_s10, 7 }
  0x12   : > { %s1449_s21 = scalar_select %p1220_p11, 1, 0 }
  0x13   : > { %s111_s27 = scalar_lea.hbm %s1444_s0, %s834_s24  ;;  %s105_s28 = scalar_lea.vmem [#allocation2], %s833_s23 }
  0x14   : > { %s113_s29 = sshll.u32 %s105_s28, 4  ;;  %p1233_p0 = pnand %p982_p13, %p1203_p4  ;;  %s114_s29 = int_to_ptr.vmem [resolvable:$true] %s113_s29 }
  0x15   : > { %p835_p1 = scmp.ge.s32.totalorder %s1145_s11, 1  ;;  %p118_p2 = scmp.lt.s32.totalorder %s1145_s11, 3 }
  0x16   : > { %s102_s2 = scalar_lea.sflag [#allocation3], %s101_s22  ;;  %p1039_p3 = pneg %p1233_p0 }
  0x17   : > { %s1050_s3 = scalar_lea.vmem %s114_s29, 128  ;;  %s1147_s4 = smov [#allocation2]  }
  0x18   : > { %p1051_p5 = scmp.ne.s32.totalorder %s114_s29, %s1050_s3  ;;  %s1055_s5 = sshll.u32 %s1147_s4, 4  ;;  %s1056_s5 = int_to_ptr.vmem [resolvable:$false] %s1055_s5 }
  0x19   : > { %s1057_s12 = scalar_lea.vmem %s1056_s5, 256  ;;  %p1058_p10 = scmp.lt.s32.totalorder %s114_s29, %s1056_s5 }
  0x1a   : > { %p1053_p6 = pnand %p1051_p5, %p1039_p3  ;;  %p1059_p12 = scmp.lt.s32.totalorder %s1057_s12, %s1050_s3 }
  0x1c   : > { %p1054_p7 = pneg %p1053_p6  ;;  %p1060_p4 = por %p1059_p12, %p1058_p10 }
  0x1e   : > { %p1061_p13 = pnand %p1060_p4, %p1054_p7 }
  0x20   : > { %1064 = shalt.err (!%p1061_p13)
}
  0x21   : > { %977 = dma.hbm_to_vmem [thread:$0]  (!%p1233_p0), %s111_s27, 128, %s114_s29, %s102_s2  }
  0x22   : > { %p119_p11 = pnand %p835_p1, %p118_p2 }
  0x23   : > { %s1248_s13 = sand.u32 (!%p119_p11), 1, %s1129_s7  }
  0x24   : > { %122 = sbr.rel (%p119_p11) target bundleno = 855 (0x357), region = 24  ;;  %s836_s15 = sshll.u32 (!%p119_p11), %s1248_s13, 3 }
  0x25   : > { %s125_s16 = scalar_lea.sflag (!%p119_p11), [#allocation3], %s1248_s13  ;;  %s128_s17 = scalar_lea.vmem (!%p119_p11), [#allocation2], %s836_s15 }
  0x29   : > { %1116 = dma.done.wait (%p1209_p8), %s125_s16, 128  }
  0x2a   : > { %1118 = vsyncadd (%p1209_p8), %s125_s16, 4294967168  ;;  %s837_s22 = sshll.u32 %s1248_s13, 7  ;;  %s838_s23 = sshll.u32 %s1137_s9, 3  ;;  %v1148_v0 = vmov 0.0   ;;  %v1278_v1 = vld [vmem:[%s128_s17] sm:$0xff] }
  0x2b   : > { %s1258_s24 = ssub.s32 16, %s838_s23  ;;  %s1260_s25 = scalar_lea.vmem [#allocation5], %s837_s22 }
  0x2c   : > { %152 = vst [vmem:[%s1260_s25] sm:$0xff] %v1148_v0  ;;  %153 = vst [vmem:[%s1260_s25 + $0x8] sm:$0xff] %v1148_v0  ;;  %p839_p8 = scmp.lt.s32.totalorder %s1258_s24, 8 }
  0x2d   : > { %154 = vst [vmem:[%s1260_s25 + $0x10] sm:$0xff] %v1148_v0  ;;  %155 = vst [vmem:[%s1260_s25 + $0x18] sm:$0xff] %v1148_v0 }
  0x2e   : > { %156 = vst [vmem:[%s1260_s25 + $0x20] sm:$0xff] %v1148_v0  ;;  %157 = vst [vmem:[%s1260_s25 + $0x28] sm:$0xff] %v1148_v0 }
  0x2f   : > { %158 = vst [vmem:[%s1260_s25 + $0x30] sm:$0xff] %v1148_v0  ;;  %159 = vst [vmem:[%s1260_s25 + $0x38] sm:$0xff] %v1148_v0  ;;  %175 = sbr.rel (%p839_p8) target bundleno = 435 (0x1b3), region = 36 }
  0x30   : > { %160 = vst [vmem:[%s1260_s25 + $0x40] sm:$0xff] %v1148_v0  ;;  %161 = vst [vmem:[%s1260_s25 + $0x48] sm:$0xff] %v1148_v0 }
  0x31   : > { %162 = vst [vmem:[%s1260_s25 + $0x50] sm:$0xff] %v1148_v0  ;;  %163 = vst [vmem:[%s1260_s25 + $0x58] sm:$0xff] %v1148_v0 }
  0x32   : > { %164 = vst [vmem:[%s1260_s25 + $0x60] sm:$0xff] %v1148_v0  ;;  %165 = vst [vmem:[%s1260_s25 + $0x68] sm:$0xff] %v1148_v0 }
  0x33   : > { %166 = vst [vmem:[%s1260_s25 + $0x70] sm:$0xff] %v1148_v0  ;;  %167 = vst [vmem:[%s1260_s25 + $0x78] sm:$0xff] %v1148_v0 }
  0x34   : > { %192 = vxpose.xlu0.b32.start.end [1/1] (short) %v1278_v1, 128  ;;  %914 = vmatprep.subr.mxu0 %v1278_v1  ;;  %vm224_vm0 = vcmask 64512   ;;  %v177_v18 = vld [vmem:[%s1260_s25 + $0x8] sm:$0xff]  ;;  %v176_v20 = vld [vmem:[%s1260_s25] sm:$0xff]  ;;  %v179_v24 = vld [vmem:[%s1260_s25 + $0x18] sm:$0xff] }
  0x35   : > { %915 = vmatpush3.msra.mxu0 %v1278_v1  ;;  %966 = vmatprep.subr.mxu1 %v1278_v1  ;;  %v178_v26 = vld [vmem:[%s1260_s25 + $0x10] sm:$0xff]  ;;  %v181_v30 = vld [vmem:[%s1260_s25 + $0x28] sm:$0xff]  ;;  %v180_v32 = vld [vmem:[%s1260_s25 + $0x20] sm:$0xff] }
  0x36   : > { %967 = vmatpush3.msra.mxu1 %v1278_v1  ;;  %v183_v36 = vld [vmem:[%s1260_s25 + $0x38] sm:$0xff]  ;;  %v182_v38 = vld [vmem:[%s1260_s25 + $0x30] sm:$0xff] }
  0x37   : > { %v185_v42 = vld [vmem:[%s1260_s25 + $0x48] sm:$0xff]  ;;  %v184_v44 = vld [vmem:[%s1260_s25 + $0x40] sm:$0xff] }
  0x38   : > { %v187_v48 = vld [vmem:[%s1260_s25 + $0x58] sm:$0xff]  ;;  %v186_v50 = vld [vmem:[%s1260_s25 + $0x50] sm:$0xff] }
  0x39   : > { %v189_v54 = vld [vmem:[%s1260_s25 + $0x68] sm:$0xff]  ;;  %v188_v56 = vld [vmem:[%s1260_s25 + $0x60] sm:$0xff] }
  0x3a   : > { %v191_v60 = vld [vmem:[%s1260_s25 + $0x78] sm:$0xff]  ;;  %v190_v62 = vld [vmem:[%s1260_s25 + $0x70] sm:$0xff] }
  0xb0   : > { %v208_v2 = vpop.trf.xlu0 }
  0xb1   : > { %916 = vmatprep.mubr.msk.f32.mxu0 %vm224_vm0, %v208_v2 }
  0xb4   : > { %v209_v3 = vpop.trf.xlu0 }
  0xb5   : > { %917 = vmatmul.mubr.msk.f32.vlgmr.msra.gmra.mxu0 %vm224_vm0, %v209_v3 }
  0xb8   : > { %v210_v4 = vpop.trf.xlu0 }
  0xb9   : > { %919 = vmatprep.mubr.msk.f32.mxu0 %vm224_vm0, %v210_v4 }
  0xbc   : > { %v211_v5 = vpop.trf.xlu0 }
  0xbd   : > { %920 = vmatmul.mubr.msk.f32.gmra.mxu0 %vm224_vm0, %v211_v5 }
  0xc0   : > { %v212_v6 = vpop.trf.xlu0 }
  0xc1   : > { %922 = vmatprep.mubr.msk.f32.mxu0 %vm224_vm0, %v212_v6 }
  0xc4   : > { %v213_v7 = vpop.trf.xlu0 }
  0xc5   : > { %923 = vmatmul.mubr.msk.f32.gmra.mxu0 %vm224_vm0, %v213_v7 }
  0xc8   : > { %v214_v8 = vpop.trf.xlu0 }
  0xc9   : > { %925 = vmatprep.mubr.msk.f32.mxu0 %vm224_vm0, %v214_v8 }
  0xcc   : > { %v215_v9 = vpop.trf.xlu0 }
  0xcd   : > { %926 = vmatmul.mubr.msk.f32.gmra.mxu0 %vm224_vm0, %v215_v9 }
  0xd0   : > { %v216_v10 = vpop.trf.xlu0 }
  0xd1   : > { %928 = vmatprep.mubr.msk.f32.mxu1 %vm224_vm0, %v216_v10 }
  0xd4   : > { %v217_v11 = vpop.trf.xlu0 }
  0xd5   : > { %929 = vmatmul.mubr.msk.f32.vlgmr.msra.gmra.mxu1 %vm224_vm0, %v217_v11 }
  0xd8   : > { %v218_v12 = vpop.trf.xlu0 }
  0xd9   : > { %931 = vmatprep.mubr.msk.f32.mxu1 %vm224_vm0, %v218_v12 }
  0xdc   : > { %v219_v13 = vpop.trf.xlu0 }
  0xdd   : > { %932 = vmatmul.mubr.msk.f32.gmra.mxu1 %vm224_vm0, %v219_v13 }
  0xe0   : > { %v220_v14 = vpop.trf.xlu0 }
  0xe1   : > { %934 = vmatprep.mubr.msk.f32.mxu1 %vm224_vm0, %v220_v14 }
  0xe4   : > { %v221_v15 = vpop.trf.xlu0 }
  0xe5   : > { %935 = vmatmul.mubr.msk.f32.gmra.mxu1 %vm224_vm0, %v221_v15 }
  0xe8   : > { %v222_v16 = vpop.trf.xlu0 }
  0xe9   : > { %937 = vmatprep.mubr.msk.f32.mxu1 %vm224_vm0, %v222_v16 }
  0xec   : > { %v223_v17 = vpop.trf.xlu0 }
  0xed   : > { %938 = vmatmul.mubr.msk.f32.gmra.mxu1 %vm224_vm0, %v223_v17 }
 0x175   : > { %v918_v19 = vpop.f32.mrf.mxu0 }
 0x176   : > { %v419_v21 = vadd.f32 %v918_v19, %v177_v18 }
 0x177   : > { %v339_v22 = vpop.f32.mrf.mxu0 }
 0x178   : > { %435 = vst [vmem:[%s1260_s25 + $0x8] sm:$0xff] %v419_v21  ;;  %v418_v23 = vadd.f32 %v339_v22, %v176_v20 }
 0x17a   : > { %434 = vst [vmem:[%s1260_s25] sm:$0xff] %v418_v23 }
 0x17d   : > { %v921_v25 = vpop.f32.mrf.mxu0 }
 0x17e   : > { %v421_v27 = vadd.f32 %v921_v25, %v179_v24 }
 0x17f   : > { %v349_v28 = vpop.f32.mrf.mxu0 }
 0x180   : > { %437 = vst [vmem:[%s1260_s25 + $0x18] sm:$0xff] %v421_v27  ;;  %v420_v29 = vadd.f32 %v349_v28, %v178_v26 }
 0x182   : > { %436 = vst [vmem:[%s1260_s25 + $0x10] sm:$0xff] %v420_v29 }
 0x185   : > { %v924_v31 = vpop.f32.mrf.mxu0 }
 0x186   : > { %v423_v33 = vadd.f32 %v924_v31, %v181_v30 }
 0x187   : > { %v359_v34 = vpop.f32.mrf.mxu0 }
 0x188   : > { %439 = vst [vmem:[%s1260_s25 + $0x28] sm:$0xff] %v423_v33  ;;  %v422_v35 = vadd.f32 %v359_v34, %v180_v32 }
 0x18a   : > { %438 = vst [vmem:[%s1260_s25 + $0x20] sm:$0xff] %v422_v35 }
 0x18d   : > { %v927_v37 = vpop.f32.mrf.mxu0 }
 0x18e   : > { %v425_v39 = vadd.f32 %v927_v37, %v183_v36 }
 0x18f   : > { %v369_v40 = vpop.f32.mrf.mxu0 }
 0x190   : > { %441 = vst [vmem:[%s1260_s25 + $0x38] sm:$0xff] %v425_v39  ;;  %v424_v41 = vadd.f32 %v369_v40, %v182_v38 }
 0x192   : > { %440 = vst [vmem:[%s1260_s25 + $0x30] sm:$0xff] %v424_v41 }
 0x195   : > { %v930_v43 = vpop.f32.mrf.mxu1 }
 0x196   : > { %v427_v45 = vadd.f32 %v930_v43, %v185_v42 }
 0x197   : > { %v379_v46 = vpop.f32.mrf.mxu1 }
 0x198   : > { %443 = vst [vmem:[%s1260_s25 + $0x48] sm:$0xff] %v427_v45  ;;  %v426_v47 = vadd.f32 %v379_v46, %v184_v44 }
 0x19a   : > { %442 = vst [vmem:[%s1260_s25 + $0x40] sm:$0xff] %v426_v47 }
 0x19d   : > { %v933_v49 = vpop.f32.mrf.mxu1 }
 0x19e   : > { %v429_v51 = vadd.f32 %v933_v49, %v187_v48 }
 0x19f   : > { %v389_v52 = vpop.f32.mrf.mxu1 }
 0x1a0   : > { %445 = vst [vmem:[%s1260_s25 + $0x58] sm:$0xff] %v429_v51  ;;  %v428_v53 = vadd.f32 %v389_v52, %v186_v50 }
 0x1a2   : > { %444 = vst [vmem:[%s1260_s25 + $0x50] sm:$0xff] %v428_v53 }
 0x1a5   : > { %v936_v55 = vpop.f32.mrf.mxu1 }
 0x1a6   : > { %v431_v57 = vadd.f32 %v936_v55, %v189_v54 }
 0x1a7   : > { %v399_v58 = vpop.f32.mrf.mxu1 }
 0x1a8   : > { %447 = vst [vmem:[%s1260_s25 + $0x68] sm:$0xff] %v431_v57  ;;  %v430_v59 = vadd.f32 %v399_v58, %v188_v56 }
 0x1aa   : > { %446 = vst [vmem:[%s1260_s25 + $0x60] sm:$0xff] %v430_v59 }
 0x1ad   : > { %v939_v61 = vpop.f32.mrf.mxu1 }
 0x1ae   : > { %v433_v63 = vadd.f32 %v939_v61, %v191_v60 }
 0x1af   : > { %v409_v0 = vpop.f32.mrf.mxu1 }
 0x1b0   : > { %449 = vst [vmem:[%s1260_s25 + $0x78] sm:$0xff] %v433_v63  ;;  %v432_v2 = vadd.f32 %v409_v0, %v190_v62 }
 0x1b2   : > { %448 = vst [vmem:[%s1260_s25 + $0x70] sm:$0xff] %v432_v2 }
 0x1b3 PF: > { %p856_p11 = scmp.ge.s32.totalorder %s1258_s24, 8 }
 0x1b5   : > { %453 = sbr.rel (%p856_p11) target bundleno = 831 (0x33f), region = 40 }
 0x1ba   : > { %v454_v3 = vlaneseq  ;;  %v456_v4 = vstv %s1258_s24  ;;  %vm507_vm2 = vcmask 64512   ;;  %v460_v22 = vld [vmem:[%s1260_s25 + $0x8] sm:$0xff]  ;;  %v459_v24 = vld [vmem:[%s1260_s25] sm:$0xff]  ;;  %v462_v28 = vld [vmem:[%s1260_s25 + $0x18] sm:$0xff] }
 0x1bb   : > { %v461_v30 = vld [vmem:[%s1260_s25 + $0x10] sm:$0xff]  ;;  %v464_v34 = vld [vmem:[%s1260_s25 + $0x28] sm:$0xff]  ;;  %v463_v36 = vld [vmem:[%s1260_s25 + $0x20] sm:$0xff] }
 0x1bc   : > { %v455_v5 = vshrl.u32 %v454_v3, 7  ;;  %v466_v40 = vld [vmem:[%s1260_s25 + $0x38] sm:$0xff]  ;;  %v465_v42 = vld [vmem:[%s1260_s25 + $0x30] sm:$0xff]  ;;  %v468_v46 = vld [vmem:[%s1260_s25 + $0x48] sm:$0xff] }
 0x1bd   : > { %v467_v48 = vld [vmem:[%s1260_s25 + $0x40] sm:$0xff]  ;;  %v470_v52 = vld [vmem:[%s1260_s25 + $0x58] sm:$0xff]  ;;  %v469_v54 = vld [vmem:[%s1260_s25 + $0x50] sm:$0xff] }
 0x1be   : > { %vm457_vm1 = vcmp.lt.s32.totalorder %v455_v5, %v456_v4  ;;  %v472_v58 = vld [vmem:[%s1260_s25 + $0x68] sm:$0xff]  ;;  %v471_v60 = vld [vmem:[%s1260_s25 + $0x60] sm:$0xff]  ;;  %v474_v0 = vld [vmem:[%s1260_s25 + $0x78] sm:$0xff] }
 0x1bf   : > { %v458_v6 = vsel %vm457_vm1, %v1278_v1, 0.0  ;;  %940 = vmatprep.subr.msk.mxu0 %vm457_vm1, %v1278_v1  ;;  %968 = vmatprep.subr.msk.mxu1 %vm457_vm1, %v1278_v1  ;;  %v473_v3 = vld [vmem:[%s1260_s25 + $0x70] sm:$0xff] }
 0x1c0   : > { %475 = vxpose.xlu0.b32.start.end [1/1] (short) %v458_v6, 128  ;;  %941 = vmatpush3.msk.msra.mxu0 %vm457_vm1, %v1278_v1 }
 0x1c1   : > { %969 = vmatpush3.msk.msra.mxu1 %vm457_vm1, %v1278_v1 }
 0x23c   : > { %v491_v7 = vpop.trf.xlu0 }
 0x23d   : > { %942 = vmatprep.mubr.msk.f32.mxu0 %vm507_vm2, %v491_v7 }
 0x240   : > { %v492_v8 = vpop.trf.xlu0 }
 0x241   : > { %943 = vmatmul.mubr.msk.f32.vlgmr.msra.gmra.mxu0 %vm507_vm2, %v492_v8 }
 0x244   : > { %v493_v9 = vpop.trf.xlu0 }
 0x245   : > { %945 = vmatprep.mubr.msk.f32.mxu0 %vm507_vm2, %v493_v9 }
 0x248   : > { %v494_v10 = vpop.trf.xlu0 }
 0x249   : > { %946 = vmatmul.mubr.msk.f32.gmra.mxu0 %vm507_vm2, %v494_v10 }
 0x24c   : > { %v495_v11 = vpop.trf.xlu0 }
 0x24d   : > { %948 = vmatprep.mubr.msk.f32.mxu0 %vm507_vm2, %v495_v11 }
 0x250   : > { %v496_v12 = vpop.trf.xlu0 }
 0x251   : > { %949 = vmatmul.mubr.msk.f32.gmra.mxu0 %vm507_vm2, %v496_v12 }
 0x254   : > { %v497_v1 = vpop.trf.xlu0 }
 0x255   : > { %951 = vmatprep.mubr.msk.f32.mxu0 %vm507_vm2, %v497_v1 }
 0x258   : > { %v498_v13 = vpop.trf.xlu0 }
 0x259   : > { %952 = vmatmul.mubr.msk.f32.gmra.mxu0 %vm507_vm2, %v498_v13 }
 0x25c   : > { %v499_v14 = vpop.trf.xlu0 }
 0x25d   : > { %954 = vmatprep.mubr.msk.f32.mxu1 %vm507_vm2, %v499_v14 }
 0x260   : > { %v500_v15 = vpop.trf.xlu0 }
 0x261   : > { %955 = vmatmul.mubr.msk.f32.vlgmr.msra.gmra.mxu1 %vm507_vm2, %v500_v15 }
 0x264   : > { %v501_v16 = vpop.trf.xlu0 }
 0x265   : > { %957 = vmatprep.mubr.msk.f32.mxu1 %vm507_vm2, %v501_v16 }
 0x268   : > { %v502_v17 = vpop.trf.xlu0 }
 0x269   : > { %958 = vmatmul.mubr.msk.f32.gmra.mxu1 %vm507_vm2, %v502_v17 }
 0x26c   : > { %v503_v18 = vpop.trf.xlu0 }
 0x26d   : > { %960 = vmatprep.mubr.msk.f32.mxu1 %vm507_vm2, %v503_v18 }
 0x270   : > { %v504_v19 = vpop.trf.xlu0 }
 0x271   : > { %961 = vmatmul.mubr.msk.f32.gmra.mxu1 %vm507_vm2, %v504_v19 }
 0x274   : > { %v505_v20 = vpop.trf.xlu0 }
 0x275   : > { %963 = vmatprep.mubr.msk.f32.mxu1 %vm507_vm2, %v505_v20 }
 0x278   : > { %v506_v21 = vpop.trf.xlu0 }
 0x279   : > { %964 = vmatmul.mubr.msk.f32.gmra.mxu1 %vm507_vm2, %v506_v21 }
 0x301   : > { %v944_v23 = vpop.f32.mrf.mxu0 }
 0x302   : > { %v702_v25 = vadd.f32 %v944_v23, %v460_v22 }
 0x303   : > { %v622_v26 = vpop.f32.mrf.mxu0 }
 0x304   : > { %718 = vst [vmem:[%s1260_s25 + $0x8] sm:$0xff] %v702_v25  ;;  %v701_v27 = vadd.f32 %v622_v26, %v459_v24 }
 0x306   : > { %717 = vst [vmem:[%s1260_s25] sm:$0xff] %v701_v27 }
 0x309   : > { %v947_v29 = vpop.f32.mrf.mxu0 }
 0x30a   : > { %v704_v31 = vadd.f32 %v947_v29, %v462_v28 }
 0x30b   : > { %v632_v32 = vpop.f32.mrf.mxu0 }
 0x30c   : > { %720 = vst [vmem:[%s1260_s25 + $0x18] sm:$0xff] %v704_v31  ;;  %v703_v33 = vadd.f32 %v632_v32, %v461_v30 }
 0x30e   : > { %719 = vst [vmem:[%s1260_s25 + $0x10] sm:$0xff] %v703_v33 }
 0x311   : > { %v950_v35 = vpop.f32.mrf.mxu0 }
 0x312   : > { %v706_v37 = vadd.f32 %v950_v35, %v464_v34 }
 0x313   : > { %v642_v38 = vpop.f32.mrf.mxu0 }
 0x314   : > { %722 = vst [vmem:[%s1260_s25 + $0x28] sm:$0xff] %v706_v37  ;;  %v705_v39 = vadd.f32 %v642_v38, %v463_v36 }
 0x316   : > { %721 = vst [vmem:[%s1260_s25 + $0x20] sm:$0xff] %v705_v39 }
 0x319   : > { %v953_v41 = vpop.f32.mrf.mxu0 }
 0x31a   : > { %v708_v43 = vadd.f32 %v953_v41, %v466_v40 }
 0x31b   : > { %v652_v44 = vpop.f32.mrf.mxu0 }
 0x31c   : > { %724 = vst [vmem:[%s1260_s25 + $0x38] sm:$0xff] %v708_v43  ;;  %v707_v45 = vadd.f32 %v652_v44, %v465_v42 }
 0x31e   : > { %723 = vst [vmem:[%s1260_s25 + $0x30] sm:$0xff] %v707_v45 }
 0x321   : > { %v956_v47 = vpop.f32.mrf.mxu1 }
 0x322   : > { %v710_v49 = vadd.f32 %v956_v47, %v468_v46 }
 0x323   : > { %v662_v50 = vpop.f32.mrf.mxu1 }
 0x324   : > { %726 = vst [vmem:[%s1260_s25 + $0x48] sm:$0xff] %v710_v49  ;;  %v709_v51 = vadd.f32 %v662_v50, %v467_v48 }
 0x326   : > { %725 = vst [vmem:[%s1260_s25 + $0x40] sm:$0xff] %v709_v51 }
 0x329   : > { %v959_v53 = vpop.f32.mrf.mxu1 }
 0x32a   : > { %v712_v55 = vadd.f32 %v959_v53, %v470_v52 }
 0x32b   : > { %v672_v56 = vpop.f32.mrf.mxu1 }
 0x32c   : > { %728 = vst [vmem:[%s1260_s25 + $0x58] sm:$0xff] %v712_v55  ;;  %v711_v57 = vadd.f32 %v672_v56, %v469_v54 }
 0x32e   : > { %727 = vst [vmem:[%s1260_s25 + $0x50] sm:$0xff] %v711_v57 }
 0x331   : > { %v962_v59 = vpop.f32.mrf.mxu1 }
 0x332   : > { %v714_v61 = vadd.f32 %v962_v59, %v472_v58 }
 0x333   : > { %v682_v62 = vpop.f32.mrf.mxu1 }
 0x334   : > { %730 = vst [vmem:[%s1260_s25 + $0x68] sm:$0xff] %v714_v61  ;;  %v713_v63 = vadd.f32 %v682_v62, %v471_v60 }
 0x336   : > { %729 = vst [vmem:[%s1260_s25 + $0x60] sm:$0xff] %v713_v63 }
 0x339   : > { %v965_v2 = vpop.f32.mrf.mxu1 }
 0x33a   : > { %v716_v4 = vadd.f32 %v965_v2, %v474_v0 }
 0x33b   : > { %v692_v5 = vpop.f32.mrf.mxu1 }
 0x33c   : > { %732 = vst [vmem:[%s1260_s25 + $0x78] sm:$0xff] %v716_v4  ;;  %v715_v6 = vadd.f32 %v692_v5, %v473_v3 }
 0x33e   : > { %731 = vst [vmem:[%s1260_s25 + $0x70] sm:$0xff] %v715_v6 }
 0x33f PF: > { %s879_s18 = sshll.u32 %s1137_s9, 11  ;;  %s747_s29 = sshll.u32 %s1260_s25, 4  ;;  %s1396_s29 = int_to_ptr.vmem [resolvable:$true] %s747_s29 }
 0x340   : > { %s1393_s28 = scalar_lea.hbm %s1445_s1, %s879_s18  ;;  %s734_s30 = scalar_lea.sflag [#allocation4], %s1248_s13 }
 0x341   : > { %s1065_s2 = scalar_lea.vmem %s1396_s29, 2048  ;;  %s1149_s3 = smov [#allocation5]  }
 0x342   : > { %p1066_p12 = scmp.ne.s32.totalorder %s1396_s29, %s1065_s2  ;;  %s1069_s4 = sshll.u32 %s1149_s3, 4  ;;  %s1070_s4 = int_to_ptr.vmem [resolvable:$false] %s1069_s4 }
 0x343   : > { %s1071_s9 = scalar_lea.vmem %s1070_s4, 4096  ;;  %p1072_p2 = scmp.lt.s32.totalorder %s1396_s29, %s1070_s4 }
 0x344   : > { %p1067_p0 = pnand %p1066_p12, %p1213_p9  ;;  %p1073_p3 = scmp.lt.s32.totalorder %s1071_s9, %s1065_s2 }
 0x346   : > { %p1068_p1 = pneg %p1067_p0  ;;  %p1074_p5 = por %p1073_p3, %p1072_p2 }
 0x348   : > { %p1075_p6 = pnand %p1074_p5, %p1068_p1 }
 0x34a   : > { %1078 = shalt.err (!%p1075_p6)
}
 0x34b   : > { %s1079_s5 = scalar_lea.hbm %s1393_s28, 2048  ;;  %s1083_s16 = scalar_lea.hbm %s1445_s1, 4096 }
 0x34c   : > { %p1080_p7 = scmp.ne.s32.totalorder %s1393_s28, %s1079_s5  ;;  %p1084_p13 = scmp.lt.s32.totalorder %s1393_s28, %s1445_s1 }
 0x34d   : > { %p1085_p8 = scmp.lt.s32.totalorder %s1083_s16, %s1079_s5 }
 0x34e   : > { %p1081_p10 = pnand %p1080_p7, %p1213_p9 }
 0x34f   : > { %p1086_p11 = por %p1085_p8, %p1084_p13 }
 0x350   : > { %p1082_p4 = pneg %p1081_p10 }
 0x352   : > { %p1087_p12 = pnand %p1086_p11, %p1082_p4 }
 0x354   : > { %1090 = shalt.err (!%p1087_p12)
}
 0x355   : > { %s1150_s23 = smov 128   ;;  %s1151_s24 = smov 8  }
 0x356   : > { %972 = dma.vmem_to_hbm [thread:$0]  (%p1213_p9), %s1396_s29, 2048, %s1393_s28, %s734_s30, %s1150_s23, %s1150_s23, %s1151_s24  }
 0x357 PF: > { %s762_s25 = sand.u32 1, %s1125_s6   ;;  %p1451_p0 = scmp.ne.s32.totalorder %s1449_s21, 0 }
 0x358   : > { %p1452_p1 = scmp.ge.s32.totalorder %s1145_s11, 2  ;;  %s763_s18 = scalar_lea.sflag [#allocation4], %s762_s25 }
 0x35a   : > { %p979_p2 = pnand %p1452_p1, %p1451_p0 }
 0x35c   : > { %p980_p3 = pneg %p979_p2 }
 0x35e   : > { %1120 = dma.done.wait (%p980_p3), %s763_s18, 2048  }
 0x35f   : > { %1122 = vsyncadd (%p980_p3), %s763_s18, 4294965248  ;;  %s17_s11 = sadd.s32 1, %s1145_s11   ;;  %s1453_s6 = smov %s1129_s7 }
 0x360   : > { %p14_p5 = scmp.ge.s32.totalorder %s17_s11, 4   ;;  %s1454_s7 = smov %s1133_s8 }
 0x361   : > { %s1455_s8 = smov %s1218_s20  ;;  %s1456_s9 = smov %s1141_s10 }
 0x362   : > { %s1457_s10 = smov %s1459_s14  ;;  %16 = sbr.rel (!%p14_p5) target bundleno = 6 (0x6), region = 81 }
 0x367   :  { %768 = vsyncpa [#allocation3], 1 }
 0x368   :  { %770 = vsyncpa [#allocation3 + $0x1], 1 }
 0x369   :  { %771 = vsyncpa [#allocation4], 1 }
 0x36a   :  { %773 = vsyncpa [#allocation4 + $0x1], 1 }

</bundles_post_ra>
